<compile_context>
chip_gen: v7x
topology: tpu7x:2x2x1
jax: 0.10.0
libtpu: 0.0.40
codegen_flags: <defaults>
</compile_context>

<pallas_src>
import jax
import jax.numpy as jnp
from jax.experimental import pallas as pl
from jax.experimental.pallas import tpu as pltpu

B = 2            # batch
D = 1024         # densenet121 classifier.in_features
NC1 = 100        # classifier out_features
NC2 = 2          # classifier2 out_features
P = 128          # packed / lane-padded weight width (NC1 + NC2 <= 128)


def densenet_head_kernel(x_ref, w_ref, b_ref, o1_ref, o2_ref):
    """Fused dual-Linear head, single packed MXU matmul.

    y = x @ w_packed + b_packed              (f32 accumulation)
    lanes [0, NC1)        -> label1 logits   (written to o1_ref)
    lanes [NC1, NC1+NC2)  -> sigmoid         (rolled to lane 0, written to o2_ref)
    """
    x = x_ref[...].astype(w_ref.dtype)                               # no-op for f32 weights
    y = jnp.dot(x, w_ref[...], preferred_element_type=jnp.float32)   # (B, P) f32
    y = y + b_ref[...]                                               # broadcast (1, P)

    # Head 1: first NC1 lanes, identity.
    o1_ref[...] = y[:, :NC1]

    # Head 2: lanes NC1..NC1+NC2-1 -> rotate them down to lane 0 (XLU, cheap),
    # take the first NC2 lanes, sigmoid (EUP), store.
    y2 = pltpu.roll(y, shift=P - NC1, axis=1)[:, :NC2]               # (B, NC2)
    o2_ref[...] = jax.nn.sigmoid(y2)


def prepare_params(w1, b1, w2, b2, dtype=jnp.float32):
    """One-time packing: (D, P) weight and (1, P) f32 bias.

    dtype=jnp.float32  -> exact parity with the PyTorch reference (v6e/v7x).
    dtype=jnp.bfloat16 -> halves weight DMA (worthwhile only on v5e-class HBM).
    """
    w = jnp.zeros((D, P), jnp.float32)
    w = w.at[:, :NC1].set(w1).at[:, NC1:NC1 + NC2].set(w2)
    b = jnp.zeros((1, P), jnp.float32)
    b = b.at[:, :NC1].set(b1).at[:, NC1:NC1 + NC2].set(b2)
    return w.astype(dtype), b


@jax.jit
def densenet_forward(x, w_packed, b_packed):
    """x: (B, D).  w_packed: (D, P).  b_packed: (1, P) f32."""
    b = x.shape[0]
    vmem = pl.BlockSpec(memory_space=pltpu.MemorySpace.VMEM)
    w_bytes = w_packed.size * w_packed.dtype.itemsize

    label1, label2 = pl.pallas_call(
        densenet_head_kernel,
        out_shape=(jax.ShapeDtypeStruct((b, NC1), jnp.float32),
                   jax.ShapeDtypeStruct((b, NC2), jnp.float32)),
        in_specs=[vmem, vmem, vmem],
        out_specs=(vmem, vmem),
        cost_estimate=pl.CostEstimate(
            flops=2 * b * D * P,
            transcendentals=b * NC2,
            bytes_accessed=(x.size * x.dtype.itemsize   # activations
                            + w_bytes                   # packed weights
                            + b_packed.size * 4         # f32 bias
                            + b * (NC1 + NC2) * 4),     # f32 outputs
        ),
    )(x, w_packed, b_packed)

    return {"label1": label1, "label2": label2}


def init_params(key):
    """Deterministic init mimicking nn.Linear default (uniform +-1/sqrt(fan_in))."""
    k1, k2, k3, k4 = jax.random.split(key, 4)
    bound = 1.0 / jnp.sqrt(jnp.float32(D))
    w1 = jax.random.uniform(k1, (D, NC1), jnp.float32, -bound, bound)
    b1 = jax.random.uniform(k2, (NC1,), jnp.float32, -bound, bound)
    w2 = jax.random.uniform(k3, (D, NC2), jnp.float32, -bound, bound)
    b2 = jax.random.uniform(k4, (NC2,), jnp.float32, -bound, bound)
    return w1, b1, w2, b2


if __name__ == "__main__":
    key = jax.random.PRNGKey(0)
    kx, kp = jax.random.split(key)
    x = jax.random.normal(kx, (B, D), jnp.float32)
    w1, b1, w2, b2 = init_params(kp)

    # One-time weight packing (hoisted out of the forward path).  f32 by
    # default for exact parity; pass dtype=jnp.bfloat16 on v5e-class parts.
    w_packed, b_packed = prepare_params(w1, b1, w2, b2, dtype=jnp.float32)

    out = densenet_forward(x, w_packed, b_packed)
    jax.block_until_ready(out)

    # Reference check in plain JAX.
    ref1 = x @ w1 + b1
    ref2 = jax.nn.sigmoid(x @ w2 + b2)
    assert out["label1"].shape == (B, NC1)
    assert out["label2"].shape == (B, NC2)
    assert jnp.allclose(out["label1"], ref1, atol=2e-2, rtol=2e-2)
    assert jnp.allclose(out["label2"], ref2, atol=2e-2, rtol=2e-2)

    print("KERNEL_OK")
</pallas_src>

<mosaic_0001>
module attributes {stable_mosaic.version = 11 : i64} {
  func.func @densenet_head_kernel(%arg0: memref<2x1024xf32, #tpu.memory_space<vmem>>, %arg1: memref<1024x128xf32, #tpu.memory_space<vmem>>, %arg2: memref<1x128xf32, #tpu.memory_space<vmem>>, %arg3: memref<2x100xf32, #tpu.memory_space<vmem>>, %arg4: memref<2x2xf32, #tpu.memory_space<vmem>>) attributes {dimension_semantics = [], scalar_prefetch = 0 : i64, scratch_operands = 0 : i64, tpu.core_type = #tpu.core_type<tc>} {
    %c0 = arith.constant 0 : index
    %c0_0 = arith.constant 0 : index
    %0 = vector.load %arg0[%c0, %c0_0] : memref<2x1024xf32, #tpu.memory_space<vmem>>, vector<2x1024xf32>
    %c0_1 = arith.constant 0 : index
    %c0_2 = arith.constant 0 : index
    %1 = vector.load %arg1[%c0_1, %c0_2] : memref<1024x128xf32, #tpu.memory_space<vmem>>, vector<1024x128xf32>
    %cst = arith.constant dense<0.000000e+00> : vector<2x128xf32>
    %2 = tpu.matmul %0, %1, %cst {dimension_numbers = #tpu.dot_dimension_numbers<[1], [0], [0], [1], [0, 0, 1, 1], [], []>} : vector<2x1024xf32>, vector<1024x128xf32>, vector<2x128xf32> -> vector<2x128xf32>
    %c0_3 = arith.constant 0 : index
    %c0_4 = arith.constant 0 : index
    %3 = vector.load %arg2[%c0_3, %c0_4] : memref<1x128xf32, #tpu.memory_space<vmem>>, vector<1x128xf32>
    %4 = vector.broadcast %3 : vector<1x128xf32> to vector<2x128xf32>
    %5 = arith.addf %2, %4 : vector<2x128xf32>
    %6 = vector.extract_strided_slice %5 {offsets = [0, 0], sizes = [2, 100], strides = [1, 1]} : vector<2x128xf32> to vector<2x100xf32>
    %c0_5 = arith.constant 0 : index
    %c0_6 = arith.constant 0 : index
    %7 = vector.load %arg3[%c0_5, %c0_6] : memref<2x100xf32, #tpu.memory_space<vmem>>, vector<2x100xf32>
    tpu.vector_store %arg3[%c0_5, %c0_6], %6 {strides = array<i32>} : memref<2x100xf32, #tpu.memory_space<vmem>>, vector<2x100xf32>,
    %c28_i32 = arith.constant 28 : i32
    %8 = tpu.dynamic_rotate %5 by %c28_i32 dim 1 : vector<2x128xf32>, i32 -> vector<2x128xf32>
    %9 = vector.extract_strided_slice %8 {offsets = [0, 0], sizes = [2, 2], strides = [1, 1]} : vector<2x128xf32> to vector<2x2xf32>
    %10 = arith.negf %9 : vector<2x2xf32>
    %11 = math.exp %10 : vector<2x2xf32>
    %cst_7 = arith.constant 1.000000e+00 : f32
    %12 = vector.broadcast %cst_7 : f32 to vector<2x2xf32>
    %13 = arith.addf %12, %11 : vector<2x2xf32>
    %14 = arith.divf %12, %13 : vector<2x2xf32>
    %c0_8 = arith.constant 0 : index
    %c0_9 = arith.constant 0 : index
    %15 = vector.load %arg4[%c0_8, %c0_9] : memref<2x2xf32, #tpu.memory_space<vmem>>, vector<2x2xf32>
    tpu.vector_store %arg4[%c0_8, %c0_9], %14 {strides = array<i32>} : memref<2x2xf32, #tpu.memory_space<vmem>>, vector<2x2xf32>,
    return
  }
}

</mosaic_0001>

<bundles_post_ra>
// kernel: densenet_forward.1
= control target key start
LH: loop header
LB: loop body
LE: loop exit
PB: predicated region body
PF: predicated region fallthrough
CT: control target
= control target key end

     0   :  { %10 = vsyncpa [#allocation3], 0  ;;  %s1029_s0 = inlined_call_operand.hbm [shape: f32[2,1024], index: 0, kind: input, shape index: {}]   ;;  %s1030_s1 = inlined_call_operand.hbm [shape: f32[1024,128], index: 1, kind: input, shape index: {}]   ;;  %s1031_s2 = inlined_call_operand.vmem [shape: f32[1,128], index: 2, kind: input, shape index: {}]   ;;  %s1032_s3 = inlined_call_operand.hbm [shape: f32[2,100], index: 3, kind: output, shape index: {0}]   ;;  %s1033_s4 = inlined_call_operand.hbm [shape: f32[2,2], index: 4, kind: output, shape index: {1}]  }
   0x1   :  { %11 = vsyncpa [#allocation6], 0 }
   0x2   :  { %12 = vsyncpa [#allocation4], 0 }
   0x3   :  { %13 = vsyncpa [#allocation9], 0  ;;  %s927_s15 = smov [#allocation2]   ;;  %s928_s17 = smov [#allocation5]  }
   0x4   :  { %s20_s16 = sshll.u32 %s927_s15, 4  ;;  %s29_s18 = sshll.u32 %s928_s17, 4  ;;  %s21_s16 = int_to_ptr.vmem [resolvable:$true] %s20_s16  ;;  %s960_s18 = int_to_ptr.vmem [resolvable:$true] %s29_s18 }
   0x5   :  { %s831_s21 = scalar_lea.hbm %s1029_s0, 256 }
   0x6   :  { %p832_p0 = scmp.ne.s32.totalorder %s1029_s0, %s831_s21  ;;  %p835_p1 = scmp.lt.u32.totalorder %s831_s21, %s1029_s0 }
   0x8   :  { %p837_p2 = pnand %p835_p1, %p832_p0 }
   0xa   :  { %840 = shalt.err (!%p837_p2)
}
   0xb   :  { %s841_s26 = scalar_lea.vmem %s21_s16, 256  ;;  %p846_p4 = scmp.lt.s32.totalorder %s21_s16, %s21_s16 }
   0xc   :  { %p842_p3 = scmp.ne.s32.totalorder %s21_s16, %s841_s26  ;;  %p847_p5 = scmp.lt.s32.totalorder %s841_s26, %s841_s26 }
   0xe   :  { %p848_p6 = por %p847_p5, %p846_p4 }
  0x10   :  { %p849_p7 = pnand %p848_p6, %p842_p3 }
  0x12   :  { %852 = shalt.err (!%p849_p7)
}
  0x13   :  { %23 = dma.hbm_to_vmem [thread:$0]  %s1029_s0, 256, %s21_s16, [#allocation3]  }
  0x14   :  { %s853_s5 = scalar_lea.hbm %s1030_s1, 16384 }
  0x15   :  { %p854_p8 = scmp.ne.s32.totalorder %s1030_s1, %s853_s5  ;;  %p857_p9 = scmp.lt.u32.totalorder %s853_s5, %s1030_s1 }
  0x17   :  { %p859_p10 = pnand %p857_p9, %p854_p8 }
  0x19   :  { %862 = shalt.err (!%p859_p10)
}
  0x1a   :  { %s863_s10 = scalar_lea.vmem %s960_s18, 16384  ;;  %p868_p12 = scmp.lt.s32.totalorder %s960_s18, %s960_s18 }
  0x1b   :  { %p864_p11 = scmp.ne.s32.totalorder %s960_s18, %s863_s10  ;;  %p869_p13 = scmp.lt.s32.totalorder %s863_s10, %s863_s10 }
  0x1d   :  { %p870_p0 = por %p869_p13, %p868_p12 }
  0x1f   :  { %p871_p1 = pnand %p870_p0, %p864_p11 }
  0x21   :  { %874 = shalt.err (!%p871_p1)
}
  0x22   :  { %s929_s0 = smov 128   ;;  %s930_s11 = smov 8  }
  0x23   :  { %35 = dma.hbm_to_vmem [thread:$0]  %s1030_s1, 16384, %s960_s18, [#allocation6], %s929_s0, %s929_s0, %s930_s11  }
  0x24   :  { %919 = dma.done.wait [#allocation3], 256  }
  0x25   :  { %920 = vsyncadd [#allocation3], 4294967040 }
  0x26   :  { %921 = dma.done.wait [#allocation6], 16384  }
  0x27   :  { %922 = vsyncadd [#allocation6], 4294950912  ;;  %v62_v0 = vld [vmem:[#allocation5 + $0x80] sm:$0xff]  ;;  %v63_v1 = vld [vmem:[#allocation5 + $0x88] sm:$0xff]  ;;  %v931_v47 = vmov 1983009808   ;;  %v187_v49 = vlaneseq }
  0x28   :  { %v46_v2 = vld [vmem:[#allocation5] sm:$0xff]  ;;  %v689_v3 = vpack.c.bf16 %v63_v1, %v62_v0  ;;  %v47_v4 = vld [vmem:[#allocation5 + $0x8] sm:$0xff]  ;;  %v64_v11 = vld [vmem:[#allocation5 + $0x90] sm:$0xff]  ;;  %v185_v48 = vunpack.c.l.s4 %v931_v47  ;;  %vm505_vm0 = vcmask 812032   ;;  %s932_s15 = smov 28  }
  0x29   :  { %v94_v5 = vld [vmem:[#allocation5 + $0x180] sm:$0xff]  ;;  %v95_v6 = vld [vmem:[#allocation5 + $0x188] sm:$0xff]  ;;  %v691_v7 = vpack.c.bf16 %v47_v4, %v46_v2  ;;  %v65_v13 = vld [vmem:[#allocation5 + $0x98] sm:$0xff]  ;;  %v188_v0 = vshrl.u32 %v187_v49, 7 }
  0x2a   :  { %v721_v8 = vpack.c.bf16 %v95_v6, %v94_v5  ;;  %v78_v9 = vld [vmem:[#allocation5 + $0x100] sm:$0xff]  ;;  %v79_v10 = vld [vmem:[#allocation5 + $0x108] sm:$0xff]  ;;  %690 = vmatprep.subr.bf16.mxu0 %v689_v3  ;;  %v48_v14 = vld [vmem:[#allocation5 + $0x10] sm:$0xff]  ;;  %v693_v16 = vpack.c.bf16 %v65_v13, %v64_v11  ;;  %v186_v63 = vunpack.c.0.s8 %v185_v48 }
  0x2b   :  { %v723_v12 = vpack.c.bf16 %v79_v10, %v78_v9  ;;  %v49_v15 = vld [vmem:[#allocation5 + $0x18] sm:$0xff]  ;;  %692 = vmatpush3.bf16.msra.mxu0 %v691_v7  ;;  %v96_v18 = vld [vmem:[#allocation5 + $0x190] sm:$0xff]  ;;  %v66_v23 = vld [vmem:[#allocation5 + $0xa0] sm:$0xff] }
  0x2c   :  { %722 = vmatprep.subr.bf16.mxu1 %v721_v8  ;;  %v695_v17 = vpack.c.bf16 %v49_v15, %v48_v14  ;;  %v97_v19 = vld [vmem:[#allocation5 + $0x198] sm:$0xff]  ;;  %v80_v20 = vld [vmem:[#allocation5 + $0x110] sm:$0xff]  ;;  %v67_v24 = vld [vmem:[#allocation5 + $0xa8] sm:$0xff]  ;;  %694 = vmatprep.subr.bf16.mxu0 %v693_v16  ;;  %v991_v13 = vsub.s32 %v186_v63, %v188_v0 }
  0x2d   :  { %724 = vmatpush3.bf16.msra.mxu1 %v723_v12  ;;  %v725_v21 = vpack.c.bf16 %v97_v19, %v96_v18  ;;  %v81_v22 = vld [vmem:[#allocation5 + $0x118] sm:$0xff]  ;;  %v697_v26 = vpack.c.bf16 %v67_v24, %v66_v23  ;;  %v50_v27 = vld [vmem:[#allocation5 + $0x20] sm:$0xff]  ;;  %v51_v28 = vld [vmem:[#allocation5 + $0x28] sm:$0xff] }
  0x2e   :  { %v727_v25 = vpack.c.bf16 %v81_v22, %v80_v20  ;;  %v98_v29 = vld [vmem:[#allocation5 + $0x1a0] sm:$0xff]  ;;  %v99_v30 = vld [vmem:[#allocation5 + $0x1a8] sm:$0xff]  ;;  %v699_v33 = vpack.c.bf16 %v51_v28, %v50_v27  ;;  %v68_v35 = vld [vmem:[#allocation5 + $0xb0] sm:$0xff] }
  0x2f   :  { %726 = vmatprep.subr.bf16.mxu1 %v725_v21  ;;  %v82_v31 = vld [vmem:[#allocation5 + $0x120] sm:$0xff]  ;;  %v83_v32 = vld [vmem:[#allocation5 + $0x128] sm:$0xff]  ;;  %696 = vmatpush3.bf16.msra.mxu0 %v695_v17  ;;  %v729_v34 = vpack.c.bf16 %v99_v30, %v98_v29  ;;  %v69_v36 = vld [vmem:[#allocation5 + $0xb8] sm:$0xff] }
  0x30   :  { %v52_v37 = vld [vmem:[#allocation5 + $0x30] sm:$0xff]  ;;  %698 = vmatprep.subr.bf16.mxu0 %v697_v26  ;;  %v731_v38 = vpack.c.bf16 %v83_v32, %v82_v31  ;;  %v701_v39 = vpack.c.bf16 %v69_v36, %v68_v35  ;;  %v53_v40 = vld [vmem:[#allocation5 + $0x38] sm:$0xff]  ;;  %v70_v46 = vld [vmem:[#allocation5 + $0xc0] sm:$0xff] }
  0x31   :  { %728 = vmatpush3.bf16.msra.mxu1 %v727_v25  ;;  %v100_v41 = vld [vmem:[#allocation5 + $0x1b0] sm:$0xff]  ;;  %v101_v42 = vld [vmem:[#allocation5 + $0x1b8] sm:$0xff]  ;;  %v71_v50 = vld [vmem:[#allocation5 + $0xc8] sm:$0xff]  ;;  %v703_v51 = vpack.c.bf16 %v53_v40, %v52_v37 }
  0x32   :  { %730 = vmatprep.subr.bf16.mxu1 %v729_v34  ;;  %v733_v43 = vpack.c.bf16 %v101_v42, %v100_v41  ;;  %v84_v44 = vld [vmem:[#allocation5 + $0x130] sm:$0xff]  ;;  %v85_v45 = vld [vmem:[#allocation5 + $0x138] sm:$0xff]  ;;  %v102_v52 = vld [vmem:[#allocation5 + $0x1c0] sm:$0xff]  ;;  %v705_v55 = vpack.c.bf16 %v71_v50, %v70_v46 }
  0x33   :  { %700 = vmatpush3.bf16.msra.mxu0 %v699_v33  ;;  %v103_v53 = vld [vmem:[#allocation5 + $0x1c8] sm:$0xff]  ;;  %v735_v54 = vpack.c.bf16 %v85_v45, %v84_v44  ;;  %v54_v56 = vld [vmem:[#allocation5 + $0x40] sm:$0xff]  ;;  %v72_v61 = vld [vmem:[#allocation5 + $0xd0] sm:$0xff] }
  0x34   :  { %702 = vmatprep.subr.bf16.mxu0 %v701_v39  ;;  %v55_v57 = vld [vmem:[#allocation5 + $0x48] sm:$0xff]  ;;  %v86_v58 = vld [vmem:[#allocation5 + $0x140] sm:$0xff]  ;;  %v737_v59 = vpack.c.bf16 %v103_v53, %v102_v52  ;;  %v73_v62 = vld [vmem:[#allocation5 + $0xd8] sm:$0xff] }
  0x35   :  { %732 = vmatpush3.bf16.msra.mxu1 %v731_v38  ;;  %v87_v60 = vld [vmem:[#allocation5 + $0x148] sm:$0xff]  ;;  %v104_v1 = vld [vmem:[#allocation5 + $0x1d0] sm:$0xff]  ;;  %v105_v2 = vld [vmem:[#allocation5 + $0x1d8] sm:$0xff]  ;;  %v707_v3 = vpack.c.bf16 %v55_v57, %v54_v56  ;;  %v709_v5 = vpack.c.bf16 %v73_v62, %v72_v61 }
  0x36   :  { %734 = vmatprep.subr.bf16.mxu1 %v733_v43  ;;  %v739_v4 = vpack.c.bf16 %v87_v60, %v86_v58  ;;  %v56_v6 = vld [vmem:[#allocation5 + $0x50] sm:$0xff]  ;;  %v57_v7 = vld [vmem:[#allocation5 + $0x58] sm:$0xff]  ;;  %v741_v9 = vpack.c.bf16 %v105_v2, %v104_v1  ;;  %v74_v11 = vld [vmem:[#allocation5 + $0xe0] sm:$0xff] }
  0x37   :  { %704 = vmatpush3.bf16.msra.mxu0 %v703_v51  ;;  %v88_v8 = vld [vmem:[#allocation5 + $0x150] sm:$0xff]  ;;  %v89_v10 = vld [vmem:[#allocation5 + $0x158] sm:$0xff]  ;;  %v75_v12 = vld [vmem:[#allocation5 + $0xe8] sm:$0xff]  ;;  %v711_v16 = vpack.c.bf16 %v57_v7, %v56_v6 }
  0x38   :  { %706 = vmatprep.subr.bf16.mxu0 %v705_v55  ;;  %v106_v14 = vld [vmem:[#allocation5 + $0x1e0] sm:$0xff]  ;;  %v107_v15 = vld [vmem:[#allocation5 + $0x1e8] sm:$0xff]  ;;  %v743_v18 = vpack.c.bf16 %v89_v10, %v88_v8  ;;  %v713_v19 = vpack.c.bf16 %v75_v12, %v74_v11  ;;  %v44_v22 = vld [vmem:[#allocation2] sm:$0xff] }
  0x39   :  { %736 = vmatpush3.bf16.msra.mxu1 %v735_v54  ;;  %v58_v17 = vld [vmem:[#allocation5 + $0x60] sm:$0xff]  ;;  %v59_v20 = vld [vmem:[#allocation5 + $0x68] sm:$0xff]  ;;  %v745_v23 = vpack.c.bf16 %v107_v15, %v106_v14  ;;  %v76_v25 = vld [vmem:[#allocation5 + $0xf0] sm:$0xff]  ;;  %v190_v27 = vrot.slane %v44_v22, %v991_v13  ;;  %v183_v28 = vcombine.high %v44_v22, %v44_v22 }
  0x3a   :  { %738 = vmatprep.subr.bf16.mxu1 %v737_v59  ;;  %v90_v21 = vld [vmem:[#allocation5 + $0x160] sm:$0xff]  ;;  %v91_v24 = vld [vmem:[#allocation5 + $0x168] sm:$0xff]  ;;  %v77_v26 = vld [vmem:[#allocation5 + $0xf8] sm:$0xff]  ;;  %v715_v31 = vpack.c.bf16 %v59_v20, %v58_v17 }
  0x3b   :  { %708 = vmatpush3.bf16.msra.mxu0 %v707_v3  ;;  %v108_v29 = vld [vmem:[#allocation5 + $0x1f0] sm:$0xff]  ;;  %v109_v30 = vld [vmem:[#allocation5 + $0x1f8] sm:$0xff]  ;;  %v198_v32 = vcombine.high %v190_v27, %v190_v27  ;;  %v197_v33 = vrot.slane %v183_v28, %v991_v13  ;;  %v747_v34 = vpack.c.bf16 %v91_v24, %v90_v21  ;;  %v717_v35 = vpack.c.bf16 %v77_v26, %v76_v25  ;;  %v126_v41 = vld [vmem:[#allocation5 + $0x280] sm:$0xff] }
  0x3c   :  { %710 = vmatprep.subr.bf16.mxu0 %v709_v5  ;;  %v60_v36 = vld [vmem:[#allocation5 + $0x70] sm:$0xff]  ;;  %v61_v37 = vld [vmem:[#allocation5 + $0x78] sm:$0xff]  ;;  %v749_v39 = vpack.c.bf16 %v109_v30, %v108_v29  ;;  %v127_v42 = vld [vmem:[#allocation5 + $0x288] sm:$0xff] }
  0x3d   :  { %740 = vmatpush3.bf16.msra.mxu1 %v739_v4  ;;  %v92_v38 = vld [vmem:[#allocation5 + $0x170] sm:$0xff]  ;;  %v93_v40 = vld [vmem:[#allocation5 + $0x178] sm:$0xff]  ;;  %289 = vmatprep.mubr.f32.mxu0 %v198_v32  ;;  %v199_v43 = vcombine.high %v197_v33, %v197_v33  ;;  %v158_v44 = vld [vmem:[#allocation5 + $0x380] sm:$0xff]  ;;  %v719_v46 = vpack.c.bf16 %v61_v37, %v60_v36  ;;  %v753_v48 = vpack.c.bf16 %v127_v42, %v126_v41 }
  0x3e   :  { %742 = vmatprep.subr.bf16.mxu1 %v741_v9  ;;  %v159_v45 = vld [vmem:[#allocation5 + $0x388] sm:$0xff]  ;;  %v751_v47 = vpack.c.bf16 %v93_v40, %v92_v38  ;;  %v110_v49 = vld [vmem:[#allocation5 + $0x200] sm:$0xff]  ;;  %v128_v54 = vld [vmem:[#allocation5 + $0x290] sm:$0xff] }
  0x3f   :  { %712 = vmatpush3.bf16.msra.mxu0 %v711_v16  ;;  %359 = vmatprep.mubr.f32.mxu1 %v199_v43  ;;  %v111_v50 = vld [vmem:[#allocation5 + $0x208] sm:$0xff]  ;;  %v142_v51 = vld [vmem:[#allocation5 + $0x300] sm:$0xff]  ;;  %v785_v52 = vpack.c.bf16 %v159_v45, %v158_v44  ;;  %v129_v55 = vld [vmem:[#allocation5 + $0x298] sm:$0xff] }
  0x40   :  { %714 = vmatprep.subr.bf16.mxu0 %v713_v19  ;;  %v143_v53 = vld [vmem:[#allocation5 + $0x308] sm:$0xff]  ;;  %v160_v56 = vld [vmem:[#allocation5 + $0x390] sm:$0xff]  ;;  %v161_v57 = vld [vmem:[#allocation5 + $0x398] sm:$0xff]  ;;  %v755_v58 = vpack.c.bf16 %v111_v50, %v110_v49  ;;  %v757_v60 = vpack.c.bf16 %v129_v55, %v128_v54 }
  0x41   :  { %744 = vmatpush3.bf16.msra.mxu1 %v743_v18  ;;  %v787_v59 = vpack.c.bf16 %v143_v53, %v142_v51  ;;  %v112_v61 = vld [vmem:[#allocation5 + $0x210] sm:$0xff]  ;;  %v113_v62 = vld [vmem:[#allocation5 + $0x218] sm:$0xff]  ;;  %v789_v0 = vpack.c.bf16 %v161_v57, %v160_v56  ;;  %v130_v2 = vld [vmem:[#allocation5 + $0x2a0] sm:$0xff] }
  0x42   :  { %746 = vmatprep.subr.bf16.mxu1 %v745_v23  ;;  %v144_v63 = vld [vmem:[#allocation5 + $0x310] sm:$0xff]  ;;  %v145_v1 = vld [vmem:[#allocation5 + $0x318] sm:$0xff]  ;;  %v131_v3 = vld [vmem:[#allocation5 + $0x2a8] sm:$0xff]  ;;  %v759_v6 = vpack.c.bf16 %v113_v62, %v112_v61 }
  0x43   :  { %716 = vmatpush3.bf16.msra.mxu0 %v715_v31  ;;  %v162_v4 = vld [vmem:[#allocation5 + $0x3a0] sm:$0xff]  ;;  %v163_v5 = vld [vmem:[#allocation5 + $0x3a8] sm:$0xff]  ;;  %v791_v7 = vpack.c.bf16 %v145_v1, %v144_v63  ;;  %v761_v8 = vpack.c.bf16 %v131_v3, %v130_v2  ;;  %v132_v15 = vld [vmem:[#allocation5 + $0x2b0] sm:$0xff] }
  0x44   :  { %718 = vmatprep.subr.bf16.mxu0 %v717_v35  ;;  %v114_v9 = vld [vmem:[#allocation5 + $0x220] sm:$0xff]  ;;  %v115_v10 = vld [vmem:[#allocation5 + $0x228] sm:$0xff]  ;;  %v793_v12 = vpack.c.bf16 %v163_v5, %v162_v4  ;;  %v133_v16 = vld [vmem:[#allocation5 + $0x2b8] sm:$0xff] }
  0x45   :  { %748 = vmatpush3.bf16.msra.mxu1 %v747_v34  ;;  %v146_v11 = vld [vmem:[#allocation5 + $0x320] sm:$0xff]  ;;  %v147_v14 = vld [vmem:[#allocation5 + $0x328] sm:$0xff]  ;;  %v164_v17 = vld [vmem:[#allocation5 + $0x3b0] sm:$0xff]  ;;  %v763_v19 = vpack.c.bf16 %v115_v10, %v114_v9  ;;  %v765_v21 = vpack.c.bf16 %v133_v16, %v132_v15 }
  0x46   :  { %750 = vmatprep.subr.bf16.mxu1 %v749_v39  ;;  %v165_v18 = vld [vmem:[#allocation5 + $0x3b8] sm:$0xff]  ;;  %v795_v20 = vpack.c.bf16 %v147_v14, %v146_v11  ;;  %v116_v22 = vld [vmem:[#allocation5 + $0x230] sm:$0xff]  ;;  %v135_v28 = vld [vmem:[#allocation5 + $0x2c8] sm:$0xff] }
  0x47   :  { %720 = vmatpush3.bf16.msra.mxu0 %v719_v46  ;;  %v117_v23 = vld [vmem:[#allocation5 + $0x238] sm:$0xff]  ;;  %v148_v24 = vld [vmem:[#allocation5 + $0x330] sm:$0xff]  ;;  %v797_v25 = vpack.c.bf16 %v165_v18, %v164_v17  ;;  %v166_v29 = vld [vmem:[#allocation5 + $0x3c0] sm:$0xff] }
  0x48   :  { %754 = vmatprep.subr.bf16.mxu0 %v753_v48  ;;  %v149_v26 = vld [vmem:[#allocation5 + $0x338] sm:$0xff]  ;;  %v167_v30 = vld [vmem:[#allocation5 + $0x3c8] sm:$0xff]  ;;  %v767_v32 = vpack.c.bf16 %v117_v23, %v116_v22  ;;  %v118_v37 = vld [vmem:[#allocation5 + $0x240] sm:$0xff] }
  0x49   :  { %752 = vmatpush3.bf16.msra.mxu1 %v751_v47  ;;  %v45_v31 = vld [vmem:[#allocation2 + $0x8] sm:$0xff]  ;;  %v799_v35 = vpack.c.bf16 %v149_v26, %v148_v24  ;;  %v119_v38 = vld [vmem:[#allocation5 + $0x248] sm:$0xff]  ;;  %v150_v39 = vld [vmem:[#allocation5 + $0x340] sm:$0xff]  ;;  %v801_v40 = vpack.c.bf16 %v167_v30, %v166_v29 }
  0x4a   :  { %786 = vmatprep.subr.bf16.mxu1 %v785_v52  ;;  %290 = vmatmul.mubr.f32.vlgmr.msra.gmra.mrb[0].mxu0 %v190_v27  ;;  %v134_v27 = vld [vmem:[#allocation5 + $0x2c0] sm:$0xff]  ;;  %v200_v34 = vcombine.high %v45_v31, %v45_v31  ;;  %v151_v41 = vld [vmem:[#allocation5 + $0x348] sm:$0xff]  ;;  %v136_v42 = vld [vmem:[#allocation5 + $0x2d0] sm:$0xff]  ;;  %v771_v48 = vpack.c.bf16 %v119_v38, %v118_v37 }
  0x4b   :  { %756 = vmatpush3.bf16.msra.mxu0 %v755_v58  ;;  %v769_v36 = vpack.c.bf16 %v135_v28, %v134_v27  ;;  %v137_v43 = vld [vmem:[#allocation5 + $0x2d8] sm:$0xff]  ;;  %v168_v46 = vld [vmem:[#allocation5 + $0x3d0] sm:$0xff]  ;;  %v803_v50 = vpack.c.bf16 %v151_v41, %v150_v39  ;;  %v138_v57 = vld [vmem:[#allocation5 + $0x2e0] sm:$0xff] }
  0x4c   :  { %360 = vmatmul.mubr.f32.vlgmr.msra.gmra.mrb[0].mxu1 %v197_v33  ;;  %758 = vmatprep.subr.bf16.mxu0 %v757_v60  ;;  %v996_v33 = vrot.slane %v45_v31, %v991_v13  ;;  %v214_v45 = vrot.slane %v200_v34, %v991_v13  ;;  %v169_v47 = vld [vmem:[#allocation5 + $0x3d8] sm:$0xff]  ;;  %v773_v51 = vpack.c.bf16 %v137_v43, %v136_v42  ;;  %v120_v52 = vld [vmem:[#allocation5 + $0x250] sm:$0xff]  ;;  %v139_v58 = vld [vmem:[#allocation5 + $0x2e8] sm:$0xff] }
  0x4d   :  { %788 = vmatpush3.bf16.msra.mxu1 %v787_v59  ;;  %v121_v53 = vld [vmem:[#allocation5 + $0x258] sm:$0xff]  ;;  %v152_v54 = vld [vmem:[#allocation5 + $0x350] sm:$0xff]  ;;  %v805_v55 = vpack.c.bf16 %v169_v47, %v168_v46  ;;  %v170_v13 = vld [vmem:[#allocation5 + $0x3e0] sm:$0xff]  ;;  %v777_v62 = vpack.c.bf16 %v139_v58, %v138_v57 }
  0x4e   :  { %790 = vmatprep.subr.bf16.mxu1 %v789_v0  ;;  %v215_v44 = vcombine.high %v996_v33, %v996_v33  ;;  %v216_v49 = vcombine.high %v214_v45, %v214_v45  ;;  %v153_v56 = vld [vmem:[#allocation5 + $0x358] sm:$0xff]  ;;  %v171_v59 = vld [vmem:[#allocation5 + $0x3e8] sm:$0xff]  ;;  %v775_v60 = vpack.c.bf16 %v121_v53, %v120_v52  ;;  %v122_v63 = vld [vmem:[#allocation5 + $0x260] sm:$0xff] }
  0x4f   :  { %760 = vmatpush3.bf16.msra.mxu0 %v759_v6  ;;  %v807_v61 = vpack.c.bf16 %v153_v56, %v152_v54  ;;  %v123_v0 = vld [vmem:[#allocation5 + $0x268] sm:$0xff]  ;;  %v154_v1 = vld [vmem:[#allocation5 + $0x360] sm:$0xff]  ;;  %v809_v2 = vpack.c.bf16 %v171_v59, %v170_v13  ;;  %v140_v4 = vld [vmem:[#allocation5 + $0x2f0] sm:$0xff] }
  0x50   :  { %762 = vmatprep.subr.bf16.mxu0 %v761_v8  ;;  %429 = vmatprep.mubr.f32.mxu0 %v215_v44  ;;  %v155_v3 = vld [vmem:[#allocation5 + $0x368] sm:$0xff]  ;;  %v141_v5 = vld [vmem:[#allocation5 + $0x2f8] sm:$0xff]  ;;  %v172_v6 = vld [vmem:[#allocation5 + $0x3f0] sm:$0xff]  ;;  %v779_v8 = vpack.c.bf16 %v123_v0, %v122_v63 }
  0x51   :  { %792 = vmatpush3.bf16.msra.mxu1 %v791_v7  ;;  %499 = vmatprep.mubr.f32.mxu1 %v216_v49  ;;  %v173_v7 = vld [vmem:[#allocation5 + $0x3f8] sm:$0xff]  ;;  %v811_v9 = vpack.c.bf16 %v155_v3, %v154_v1  ;;  %v781_v10 = vpack.c.bf16 %v141_v5, %v140_v4  ;;  %v124_v11 = vld [vmem:[#allocation5 + $0x270] sm:$0xff] }
  0x52   :  { %794 = vmatprep.subr.bf16.mxu1 %v793_v12  ;;  %v125_v12 = vld [vmem:[#allocation5 + $0x278] sm:$0xff]  ;;  %v813_v14 = vpack.c.bf16 %v173_v7, %v172_v6  ;;  %v156_v15 = vld [vmem:[#allocation5 + $0x370] sm:$0xff] }
  0x53   :  { %764 = vmatpush3.bf16.msra.mxu0 %v763_v19  ;;  %v157_v16 = vld [vmem:[#allocation5 + $0x378] sm:$0xff]  ;;  %v783_v17 = vpack.c.bf16 %v125_v12, %v124_v11 }
  0x54   :  { %766 = vmatprep.subr.bf16.mxu0 %v765_v21  ;;  %v815_v18 = vpack.c.bf16 %v157_v16, %v156_v15 }
  0x55   :  { %796 = vmatpush3.bf16.msra.mxu1 %v795_v20  ;;  %v547_v20 = vld [vmem:[%s1031_s2] ss:$0 sm:$0xff]  ;;  %s933_s2 = smov [#allocation7]  }
  0x56   :  { %798 = vmatprep.subr.bf16.mxu1 %v797_v25  ;;  %s523_s16 = sshll.u32 %s933_s2, 4  ;;  %s524_s16 = int_to_ptr.vmem [resolvable:$true] %s523_s16 }
  0x57   :  { %768 = vmatpush3.bf16.msra.mxu0 %v767_v32  ;;  %s875_s17 = scalar_lea.vmem %s524_s16, 32  ;;  %p880_p3 = scmp.lt.s32.totalorder %s524_s16, %s524_s16 }
  0x58   :  { %770 = vmatprep.subr.bf16.mxu0 %v769_v36  ;;  %p876_p2 = scmp.ne.s32.totalorder %s524_s16, %s875_s17  ;;  %p881_p4 = scmp.lt.s32.totalorder %s875_s17, %s875_s17 }
  0x59   :  { %800 = vmatpush3.bf16.msra.mxu1 %v799_v35 }
  0x5a   :  { %802 = vmatprep.subr.bf16.mxu1 %v801_v40  ;;  %p882_p5 = por %p881_p4, %p880_p3 }
  0x5b   :  { %772 = vmatpush3.bf16.msra.mxu0 %v771_v48 }
  0x5c   :  { %774 = vmatprep.subr.bf16.mxu0 %v773_v51  ;;  %p883_p6 = pnand %p882_p5, %p876_p2 }
  0x5d   :  { %804 = vmatpush3.bf16.msra.mxu1 %v803_v50 }
  0x5e   :  { %806 = vmatprep.subr.bf16.mxu1 %v805_v55 }
  0x5f   :  { %776 = vmatpush3.bf16.msra.mxu0 %v775_v60 }
  0x60   :  { %778 = vmatprep.subr.bf16.mxu0 %v777_v62 }
  0x61   :  { %808 = vmatpush3.bf16.msra.mxu1 %v807_v61 }
  0x62   :  { %810 = vmatprep.subr.bf16.mxu1 %v809_v2 }
  0x63   :  { %780 = vmatpush3.bf16.msra.mxu0 %v779_v8 }
  0x64   :  { %782 = vmatprep.subr.bf16.mxu0 %v781_v10 }
  0x65   :  { %812 = vmatpush3.bf16.msra.mxu1 %v811_v9 }
  0x66   :  { %814 = vmatprep.subr.bf16.mxu1 %v813_v14 }
  0x67   :  { %784 = vmatpush3.bf16.msra.mxu0 %v783_v17 }
  0x69   :  { %816 = vmatpush3.bf16.msra.mxu1 %v815_v18 }
  0x6a   :  { %430 = vmatmul.mubr.f32.vlgmr.msra.gmra.mrb[2].mxu0 %v996_v33 }
  0x6c   :  { %500 = vmatmul.mubr.f32.vlgmr.msra.gmra.mrb[2].mxu1 %v214_v45 }
 0x11d   :  { %v581_v19 = vpop.f32.mrb[0].mxu0 }
 0x11e   :  { %v582_v21 = vpop.f32.mrb[1].mxu0 }
 0x11f   :  { %v616_v22 = vpop.f32.mrb[0].mxu1  ;;  %v583_v23 = vadd.f32 %v582_v21, %v581_v19 }
 0x120   :  { %v617_v24 = vpop.f32.mrb[1].mxu1 }
 0x121   :  { %v618_v25 = vadd.f32 %v617_v24, %v616_v22  ;;  %v292_v26 = vadd.f32 %v583_v23, %v547_v20 }
 0x123   :  { %v362_v27 = vadd.f32 %v618_v25, %v292_v26 }
 0x13d   :  { %v651_v28 = vpop.f32.mrb[2].mxu0 }
 0x13e   :  { %v652_v29 = vpop.f32.mrb[3].mxu0 }
 0x13f   :  { %v686_v30 = vpop.f32.mrb[2].mxu1  ;;  %v653_v31 = vadd.f32 %v652_v29, %v651_v28 }
 0x140   :  { %v687_v32 = vpop.f32.mrb[3].mxu1 }
 0x141   :  { %v688_v34 = vadd.f32 %v687_v32, %v686_v30  ;;  %v432_v33 = vadd.f32 %v653_v31, %v362_v27 }
 0x143   :  { %v502_v35 = vadd.f32 %v688_v34, %v432_v33 }
 0x145   :  { %507 = vrot.lane.b32.xlu0 %v502_v35, %s932_s15  ;;  %506 = vst.msk [vmem:[#allocation7] sm:$0x3] %vm505_vm0, %v502_v35 }
 0x146   :  { %886 = shalt.err (!%p883_p6)
}
 0x147   :  { %s887_s20 = scalar_lea.hbm %s1032_s3, 32 }
 0x148   :  { %p888_p7 = scmp.ne.s32.totalorder %s1032_s3, %s887_s20  ;;  %p891_p8 = scmp.lt.u32.totalorder %s887_s20, %s1032_s3 }
 0x14a   :  { %p893_p9 = pnand %p891_p8, %p888_p7 }
 0x14c   :  { %896 = shalt.err (!%p893_p9)
}
 0x14d   :  { %526 = dma.vmem_to_hbm [thread:$0]  %s524_s16, 32, %s1032_s3, [#allocation4]   ;;  %vm515_vm1 = vcmask 9216  }
 0x14e   :  { %s934_s27 = smov [#allocation8]  }
 0x14f   :  { %s533_s28 = sshll.u32 %s934_s27, 4  ;;  %s534_s28 = int_to_ptr.vmem [resolvable:$true] %s533_s28 }
 0x150   :  { %s897_s29 = scalar_lea.vmem %s534_s28, 32  ;;  %p902_p11 = scmp.lt.s32.totalorder %s534_s28, %s534_s28 }
 0x151   :  { %p898_p10 = scmp.ne.s32.totalorder %s534_s28, %s897_s29  ;;  %p903_p12 = scmp.lt.s32.totalorder %s897_s29, %s897_s29 }
 0x153   :  { %p904_p13 = por %p903_p12, %p902_p11 }
 0x155   :  { %p905_p0 = pnand %p904_p13, %p898_p10 }
 0x1b7   :  { %v508_v36 = vpop.permute.xlu0 %507 }
 0x1b8   :  { %v548_v37 = vmul.f32 -1.442695, %v508_v36 }
 0x1ba   :  { %827 = vpow2.f32 %v548_v37 }
 0x1c4   :  { %v828_v38 = vpop.eup %827 }
 0x1c5   :  { %v512_v39 = vadd.f32 1.0, %v828_v38 }
 0x1c7   :  { %829 = vrcp.f32 %v512_v39 }
 0x1d1   :  { %v830_v40 = vpop.eup %829 }
 0x1d2   :  { %516 = vst.msk [vmem:[#allocation8] sm:$0x3] %vm515_vm1, %v830_v40 }
 0x1d3   :  { %908 = shalt.err (!%p905_p0)
}
 0x1d4   :  { %s909_s5 = scalar_lea.hbm %s1033_s4, 32 }
 0x1d5   :  { %p910_p1 = scmp.ne.s32.totalorder %s1033_s4, %s909_s5  ;;  %p913_p2 = scmp.lt.u32.totalorder %s909_s5, %s1033_s4 }
 0x1d7   :  { %p915_p3 = pnand %p913_p2, %p910_p1 }
 0x1d9   :  { %918 = shalt.err (!%p915_p3)
}
 0x1da   :  { %536 = dma.vmem_to_hbm [thread:$0]  %s534_s28, 32, %s1033_s4, [#allocation9]  }
 0x1db   :  { %923 = dma.done.wait [#allocation4], 32  }
 0x1dc   :  { %924 = vsyncadd [#allocation4], 4294967264 }
 0x1dd   :  { %925 = dma.done.wait [#allocation9], 32  }
 0x1de   :  { %926 = vsyncadd [#allocation9], 4294967264 }
 0x1df   :  { %543 = vsyncpa [#allocation3], 1 }
 0x1e0   :  { %544 = vsyncpa [#allocation6], 1 }
 0x1e1   :  { %545 = vsyncpa [#allocation4], 1 }
 0x1e2   :  { %546 = vsyncpa [#allocation9], 1 }

</bundles_post_ra>
